<compile_context>
chip_gen: v7x
topology: tpu7x:2x2x1
jax: 0.10.0
libtpu: 0.0.40
codegen_flags: <defaults>
</compile_context>

<pallas_src>
import jax
import jax.numpy as jnp
from jax.experimental import pallas as pl
from jax.experimental.pallas import tpu as pltpu


def _transition_kernel(x_ref, scale_ref, bias_ref, w_ref, o_ref):
    """One (batch, row-block) tile.

    x_ref:     (1, bm, 4*Cin)  bf16 -- each pooled pixel's 2x2 window gathered
                                along the lane axis as 4 contiguous channel groups
    scale_ref: (1, 4*Cin)      f32  -- folded BN scale, tiled over the 4 groups
    bias_ref:  (1, 4*Cin)      f32  -- folded BN bias,  tiled over the 4 groups
    w_ref:     (Cin, Cout)     bf16 -- 1x1 conv weight with the 0.25 pool factor folded in
    o_ref:     (1, bm, Cout)   f32
    """
    cin = w_ref.shape[0]
    x = x_ref[0]                                                # (bm, 4*Cin) bf16
    # BN + ReLU in f32 on the VPU (bf16 * f32 promotes to f32).
    z = jnp.maximum(x * scale_ref[...] + bias_ref[...], 0.0)    # (bm, 4*Cin) f32
    # 2x2 average pool == sum of the 4 window offsets (0.25 is folded into w).
    p = (z[:, 0:cin] + z[:, cin:2 * cin]
         + z[:, 2 * cin:3 * cin] + z[:, 3 * cin:4 * cin])       # (bm, Cin) f32
    # 1x1 conv on the already-pooled activations: bf16 MXU matmul, f32 accumulate.
    o_ref[0] = jnp.dot(p.astype(w_ref.dtype), w_ref[...],
                       preferred_element_type=jnp.float32)      # (bm, Cout)


def transition_forward(x_nchw, gamma, beta, running_mean, running_var, conv_w,
                       eps=1e-5, x_tile_budget_bytes=2 * 1024 * 1024):
    """Forward pass of Transition. Input/output are NCHW like PyTorch."""
    N, Cin, H, W = x_nchw.shape
    assert H % 2 == 0 and W % 2 == 0, "avg_pool2d(2) path requires even H, W"
    Cout = conv_w.shape[0]
    Hp, Wp = H // 2, W // 2
    M = Hp * Wp

    # --- parameter folding (plain JAX, done once) ---
    inv_std = 1.0 / jnp.sqrt(running_var.astype(jnp.float32) + eps)
    scale = (gamma * inv_std).astype(jnp.float32)                    # (Cin,)
    bias = (beta - running_mean * scale).astype(jnp.float32)         # (Cin,)
    scale4 = jnp.tile(scale, 4).reshape(1, 4 * Cin)                  # per-lane BN scale
    bias4 = jnp.tile(bias, 4).reshape(1, 4 * Cin)
    # 0.25 average-pool factor folded into the 1x1 conv weight.
    w = (0.25 * conv_w.reshape(Cout, Cin).T).astype(jnp.bfloat16)    # (Cin, Cout)

    # --- layout: gather each 2x2 window into the channel (lane) axis ---
    # (N, Cin, H, W) -> (N, Hp*Wp, 4*Cin); one XLA transpose, reshapes are free.
    # TODO(synk): at real DenseNet sizes fuse this layout change into the producer
    # (or consume NCHW directly in-kernel) to avoid one extra HBM round trip of x.
    x_r = x_nchw.reshape(N, Cin, Hp, 2, Wp, 2)
    x_r = jnp.transpose(x_r, (0, 2, 4, 3, 5, 1)).reshape(N, M, 4 * Cin)
    x_r = x_r.astype(jnp.bfloat16)

    # --- spatial tiling: largest 8-aligned row block that fits the VMEM budget ---
    row_bytes = 4 * Cin * 2 + Cout * 4          # bf16 in + f32 out per pooled pixel
    cands = [r for r in range(1, M + 1)
             if M % r == 0 and (r % 8 == 0 or r == M)]
    fitting = [r for r in cands if r * row_bytes <= x_tile_budget_bytes]
    bm = max(fitting) if fitting else min(cands)
    grid = (N, M // bm)

    out = pl.pallas_call(
        _transition_kernel,
        out_shape=jax.ShapeDtypeStruct((N, M, Cout), jnp.float32),
        grid_spec=pltpu.PrefetchScalarGridSpec(
            num_scalar_prefetch=0,
            grid=grid,
            in_specs=[
                pl.BlockSpec((1, bm, 4 * Cin), lambda n, r: (n, r, 0)),
                pl.BlockSpec((1, 4 * Cin), lambda n, r: (0, 0)),
                pl.BlockSpec((1, 4 * Cin), lambda n, r: (0, 0)),
                pl.BlockSpec((Cin, Cout), lambda n, r: (0, 0)),
            ],
            out_specs=pl.BlockSpec((1, bm, Cout), lambda n, r: (n, r, 0)),
        ),
        compiler_params=pltpu.CompilerParams(
            dimension_semantics=("parallel", "parallel"),
            vmem_limit_bytes=32 * 1024 * 1024,
        ),
    )(x_r, scale4, bias4, w)

    # (N, Hp*Wp, Cout) -> NCHW
    return out.reshape(N, Hp, Wp, Cout).transpose(0, 3, 1, 2)


def _reference_forward(x, gamma, beta, mean, var, conv_w, eps=1e-5):
    """Pure-JAX f32 reference reproducing the PyTorch forward (inference BN)."""
    z = (x - mean[None, :, None, None]) / jnp.sqrt(var[None, :, None, None] + eps)
    z = z * gamma[None, :, None, None] + beta[None, :, None, None]
    z = jnp.maximum(z, 0.0)
    c = jnp.einsum("nihw,oi->nohw", z,
                   conv_w.reshape(conv_w.shape[0], conv_w.shape[1]))
    N, Co, H, W = c.shape
    return c.reshape(N, Co, H // 2, 2, W // 2, 2).mean(axis=(3, 5))


if __name__ == "__main__":
    N, in_planes, out_planes, H, W = 2, 8, 4, 16, 16

    key = jax.random.PRNGKey(0)
    k_x, k_g, k_b, k_m, k_v, k_w = jax.random.split(key, 6)

    x = jax.random.normal(k_x, (N, in_planes, H, W), dtype=jnp.float32)
    gamma = jax.random.normal(k_g, (in_planes,), dtype=jnp.float32) * 0.1 + 1.0
    beta = jax.random.normal(k_b, (in_planes,), dtype=jnp.float32) * 0.1
    running_mean = jax.random.normal(k_m, (in_planes,), dtype=jnp.float32) * 0.1
    running_var = jax.random.uniform(k_v, (in_planes,), dtype=jnp.float32,
                                     minval=0.5, maxval=1.5)
    # Conv2d(in, out, 1, bias=False) weight: (out_planes, in_planes, 1, 1)
    conv_w = jax.random.normal(k_w, (out_planes, in_planes, 1, 1),
                               dtype=jnp.float32) * (1.0 / jnp.sqrt(in_planes))

    out = transition_forward(x, gamma, beta, running_mean, running_var, conv_w)
    out = jax.block_until_ready(out)

    ref = _reference_forward(x, gamma, beta, running_mean, running_var, conv_w)
    assert out.shape == (N, out_planes, H // 2, W // 2), out.shape
    # bf16 MXU inputs -> loosened tolerance vs the f32 reference.
    max_err = float(jnp.max(jnp.abs(out - ref)))
    assert jnp.allclose(out, ref, atol=3e-2, rtol=3e-2), max_err

    print("KERNEL_OK")
</pallas_src>

<mosaic_0001>
module attributes {stable_mosaic.version = 11 : i64} {
  func.func @_transition_kernel(%arg0: i32, %arg1: i32, %arg2: memref<1x64x32xbf16, #tpu.memory_space<vmem>>, %arg3: memref<1x32xf32, #tpu.memory_space<vmem>>, %arg4: memref<1x32xf32, #tpu.memory_space<vmem>>, %arg5: memref<8x4xbf16, #tpu.memory_space<vmem>>, %arg6: memref<1x64x4xf32, #tpu.memory_space<vmem>>) attributes {dimension_semantics = [#tpu.dimension_semantics<parallel>, #tpu.dimension_semantics<parallel>], iteration_bounds = array<i64: 2, 1>, scalar_prefetch = 0 : i64, scratch_operands = 0 : i64, tpu.core_type = #tpu.core_type<tc>, window_params = [{transform_indices = @transform_0, window_bounds = array<i64: 1, 64, 32>}, {pipeline_mode = #tpu.pipeline_mode<synchronous>, transform_indices = @transform_1, window_bounds = array<i64: 1, 32>}, {pipeline_mode = #tpu.pipeline_mode<synchronous>, transform_indices = @transform_2, window_bounds = array<i64: 1, 32>}, {pipeline_mode = #tpu.pipeline_mode<synchronous>, transform_indices = @transform_3, window_bounds = array<i64: 8, 4>}, {transform_indices = @transform_4, window_bounds = array<i64: 1, 64, 4>}]} {
    %c0 = arith.constant 0 : index
    %c0_0 = arith.constant 0 : index
    %c0_1 = arith.constant 0 : index
    %0 = vector.load %arg2[%c0, %c0_0, %c0_1] : memref<1x64x32xbf16, #tpu.memory_space<vmem>>, vector<1x64x32xbf16>
    %1 = vector.shape_cast %0 : vector<1x64x32xbf16> to vector<64x32xbf16>
    %c0_2 = arith.constant 0 : index
    %c0_3 = arith.constant 0 : index
    %2 = vector.load %arg3[%c0_2, %c0_3] : memref<1x32xf32, #tpu.memory_space<vmem>>, vector<1x32xf32>
    %3 = arith.extf %1 : vector<64x32xbf16> to vector<64x32xf32>
    %4 = vector.broadcast %2 : vector<1x32xf32> to vector<64x32xf32>
    %5 = arith.mulf %3, %4 : vector<64x32xf32>
    %c0_4 = arith.constant 0 : index
    %c0_5 = arith.constant 0 : index
    %6 = vector.load %arg4[%c0_4, %c0_5] : memref<1x32xf32, #tpu.memory_space<vmem>>, vector<1x32xf32>
    %7 = vector.broadcast %6 : vector<1x32xf32> to vector<64x32xf32>
    %8 = arith.addf %5, %7 : vector<64x32xf32>
    %cst = arith.constant 0.000000e+00 : f32
    %9 = vector.broadcast %cst : f32 to vector<64x32xf32>
    %10 = arith.maximumf %8, %9 : vector<64x32xf32>
    %11 = vector.extract_strided_slice %10 {offsets = [0, 0], sizes = [64, 8], strides = [1, 1]} : vector<64x32xf32> to vector<64x8xf32>
    %12 = vector.extract_strided_slice %10 {offsets = [0, 8], sizes = [64, 8], strides = [1, 1]} : vector<64x32xf32> to vector<64x8xf32>
    %13 = arith.addf %11, %12 : vector<64x8xf32>
    %14 = vector.extract_strided_slice %10 {offsets = [0, 16], sizes = [64, 8], strides = [1, 1]} : vector<64x32xf32> to vector<64x8xf32>
    %15 = arith.addf %13, %14 : vector<64x8xf32>
    %16 = vector.extract_strided_slice %10 {offsets = [0, 24], sizes = [64, 8], strides = [1, 1]} : vector<64x32xf32> to vector<64x8xf32>
    %17 = arith.addf %15, %16 : vector<64x8xf32>
    %18 = arith.truncf %17 : vector<64x8xf32> to vector<64x8xbf16>
    %c0_6 = arith.constant 0 : index
    %c0_7 = arith.constant 0 : index
    %19 = vector.load %arg5[%c0_6, %c0_7] : memref<8x4xbf16, #tpu.memory_space<vmem>>, vector<8x4xbf16>
    %cst_8 = arith.constant dense<0.000000e+00> : vector<64x4xf32>
    %20 = tpu.matmul %18, %19, %cst_8 {dimension_numbers = #tpu.dot_dimension_numbers<[1], [0], [0], [1], [0, 0, 1, 1], [], []>} : vector<64x8xbf16>, vector<8x4xbf16>, vector<64x4xf32> -> vector<64x4xf32>
    %c0_9 = arith.constant 0 : index
    %c0_10 = arith.constant 0 : index
    %c0_11 = arith.constant 0 : index
    %21 = vector.load %arg6[%c0_9, %c0_10, %c0_11] : memref<1x64x4xf32, #tpu.memory_space<vmem>>, vector<1x64x4xf32>
    %22 = vector.shape_cast %21 : vector<1x64x4xf32> to vector<64x4xf32>
    %23 = vector.shape_cast %20 : vector<64x4xf32> to vector<1x64x4xf32>
    tpu.vector_store %arg6[%c0_9, %c0_10, %c0_11], %23 {strides = array<i32>} : memref<1x64x4xf32, #tpu.memory_space<vmem>>, vector<1x64x4xf32>,
    return
  }
  func.func @transform_0(%arg0: i32, %arg1: i32) -> (i32, i32, i32) {
    %c0_i32 = arith.constant 0 : i32
    %c0_i32_0 = arith.constant 0 : i32
    return %arg0, %arg1, %c0_i32 : i32, i32, i32
  }
  func.func @transform_1(%arg0: i32, %arg1: i32) -> (i32, i32) {
    %c0_i32 = arith.constant 0 : i32
    %c0_i32_0 = arith.constant 0 : i32
    %c0_i32_1 = arith.constant 0 : i32
    return %c0_i32, %c0_i32_0 : i32, i32
  }
  func.func @transform_2(%arg0: i32, %arg1: i32) -> (i32, i32) {
    %c0_i32 = arith.constant 0 : i32
    %c0_i32_0 = arith.constant 0 : i32
    %c0_i32_1 = arith.constant 0 : i32
    return %c0_i32, %c0_i32_0 : i32, i32
  }
  func.func @transform_3(%arg0: i32, %arg1: i32) -> (i32, i32) {
    %c0_i32 = arith.constant 0 : i32
    %c0_i32_0 = arith.constant 0 : i32
    %c0_i32_1 = arith.constant 0 : i32
    return %c0_i32, %c0_i32_0 : i32, i32
  }
  func.func @transform_4(%arg0: i32, %arg1: i32) -> (i32, i32, i32) {
    %c0_i32 = arith.constant 0 : i32
    %c0_i32_0 = arith.constant 0 : i32
    return %arg0, %arg1, %c0_i32 : i32, i32, i32
  }
}

</mosaic_0001>

<bundles_post_ra>
// kernel: tpu_custom_call.1
= control target key start
LH: loop header
LB: loop body
LE: loop exit
PB: predicated region body
PF: predicated region fallthrough
CT: control target
= control target key end

     0   :  { %s715_s15 = smov 0   ;;  %s717_s16 = smov 0   ;;  %s815_s0 = inlined_call_operand.vmem [shape: bf16[2,64,32], index: 0, kind: input, shape index: {}]   ;;  %s816_s1 = inlined_call_operand.vmem [shape: f32[1,32], index: 1, kind: input, shape index: {}]   ;;  %s817_s2 = inlined_call_operand.vmem [shape: f32[1,32], index: 2, kind: input, shape index: {}]   ;;  %s818_s3 = inlined_call_operand.vmem [shape: bf16[8,4], index: 3, kind: input, shape index: {}]   ;;  %s819_s4 = inlined_call_operand.vmem [shape: f32[2,64,4], index: 4, kind: output, shape index: {}]  }
   0x1   :  { %s719_s17 = smov 0  }
   0x2 LB: > { %s26_s18 = sadd.s32 1, %s681_s16  ;;  %p583_p0 = scmp.ge.s32.totalorder %s685_s17, 1  ;;  %s685_s17 = sphi %s719_s17, %s14_s17   ;;  %s681_s16 = sphi %s717_s16, %s821_s16   ;;  %s677_s15 = sphi %s715_s15, %s820_s15  }
   0x3   : > { %p28_p1 = scmp.ge.s32.totalorder %s26_s18, 2  ;;  %p183_p2 = scmp.lt.s32.totalorder %s685_s17, 3 }
   0x5   : > { %s823_s18 = smov (%p28_p1, %s26_s18), 0  ;;  %p184_p3 = pnand %p583_p0, %p183_p2 }
   0x6   : > { %p218_p4 = scmp.lt.s32.totalorder (!%p184_p3), %s677_s15, 1  ;;  %v588_v0 = vld [vmem:[%s816_s1] ss:$0 sm:$0xff] (!%p184_p3)  ;;  %s687_s27 = smov (!%p184_p3), 120   ;;  %vm414_vm0 = vcmask (!%p184_p3), 1043456   ;;  %vm401_vm1 = vcmask (!%p184_p3), 64512  }
   0x7   : > { %187 = sbr.rel (%p184_p3) target bundleno = 405 (0x195), region = 36  ;;  %v589_v9 = vld [vmem:[%s817_s2] ss:$0 sm:$0xff] (!%p184_p3)  ;;  %s688_s28 = smov (!%p184_p3), 112   ;;  %vm483_vm2 = vcmask (!%p184_p3), 31744  }
   0x8   : > { %v400_v38 = vld [vmem:[%s818_s3] sm:$0xf] (!%p184_p3)  ;;  %s689_s5 = smov (!%p184_p3), 104  }
   0x9   : > { %634 = vmatprep.subr.msk.bf16.mxu0 (!%p184_p3), %vm414_vm0, %v400_v38  ;;  %v416_v39 = vsel (!%p184_p3), %vm414_vm0, %v400_v38, 0  ;;  %635 = vmatprep.subr.msk.bf16.mxu1 (!%p184_p3), %vm414_vm0, %v400_v38 }
   0xa   : > { %623 = vmatpush3.bf16.msra.mxu0 (!%p184_p3), %v416_v39  ;;  %633 = vmatpush3.bf16.msra.mxu1 (!%p184_p3), %v416_v39 }
   0xe   : > { %s825_s15 = smov (!%p218_p4, %s677_s15), 1 }
   0xf   : > { %s596_s19 = sshll.u32 %s825_s15, 5  ;;  %s597_s6 = sshll.u32 %s825_s15, 6 }
  0x10   : > { %s225_s22 = scalar_lea.vmem %s815_s0, %s596_s19  ;;  %s235_s9 = scalar_lea.vmem %s819_s4, %s597_s6 }
  0x11   : > { %v615_v1 = vld [vmem:[%s225_s22 + $0x10] sm:$0xff]   ;;  %v599_v2 = vld [vmem:[%s225_s22] sm:$0xff]   ;;  %v614_v3 = vld [vmem:[%s225_s22 + $0x8] sm:$0xff]  }
  0x12   : > { %v608_v4 = vunpack.c.l.bf16 %v615_v1  ;;  %v600_v5 = vunpack.c.l.bf16 %v599_v2  ;;  %v609_v6 = vunpack.c.h.bf16 %v615_v1  ;;  %v601_v7 = vunpack.c.h.bf16 %v599_v2  ;;  %v616_v8 = vld [vmem:[%s225_s22 + $0x18] sm:$0xff]  }
  0x13   : > { %v605_v10 = vunpack.c.h.bf16 %v614_v3  ;;  %v604_v11 = vunpack.c.l.bf16 %v614_v3  ;;  %v613_v18 = vunpack.c.h.bf16 %v616_v8  ;;  %v612_v19 = vunpack.c.l.bf16 %v616_v8 }
  0x14   : > { %v265_v12 = vmul.f32 %v608_v4, %v588_v0  ;;  %v261_v13 = vmul.f32 %v600_v5, %v588_v0  ;;  %v266_v14 = vmul.f32 %v609_v6, %v588_v0  ;;  %v262_v15 = vmul.f32 %v601_v7, %v588_v0 }
  0x15   : > { %v264_v16 = vmul.f32 %v605_v10, %v588_v0  ;;  %v263_v17 = vmul.f32 %v604_v11, %v588_v0  ;;  %v268_v26 = vmul.f32 %v613_v18, %v588_v0  ;;  %v267_v27 = vmul.f32 %v612_v19, %v588_v0 }
  0x16   : > { %v280_v20 = vadd.f32 %v589_v9, %v265_v12  ;;  %v276_v21 = vadd.f32 %v589_v9, %v261_v13  ;;  %v281_v22 = vadd.f32 %v589_v9, %v266_v14  ;;  %v277_v23 = vadd.f32 %v589_v9, %v262_v15 }
  0x17   : > { %v279_v30 = vadd.f32 %v589_v9, %v264_v16  ;;  %v278_v31 = vadd.f32 %v589_v9, %v263_v17  ;;  %v283_v34 = vadd.f32 %v589_v9, %v268_v26  ;;  %v282_v35 = vadd.f32 %v589_v9, %v267_v27 }
  0x18   : > { %v745_v24 = vmax.f32 %v280_v20, 0.0  ;;  %v747_v25 = vmax.f32 %v276_v21, 0.0  ;;  %v751_v28 = vmax.f32 %v281_v22, 0.0  ;;  %v285_v29 = vmax.f32 %v277_v23, 0.0 }
  0x19   : > { %v754_v32 = vmax.f32 %v279_v30, 0.0  ;;  %v756_v33 = vmax.f32 %v278_v31, 0.0  ;;  %v760_v36 = vmax.f32 %v283_v34, 0.0  ;;  %v762_v37 = vmax.f32 %v282_v35, 0.0 }
  0x1a   : > { %308 = vrot.lane.b32.xlu1 %v745_v24, %s687_s27  ;;  %300 = vrot.lane.b32.xlu0 %v747_v25, %s687_s27 }
  0x1e   : > { %310 = vrot.lane.b32.xlu1 %v751_v28, %s687_s27  ;;  %302 = vrot.lane.b32.xlu0 %v285_v29, %s687_s27 }
  0x22   : > { %306 = vrot.lane.b32.xlu1 %v754_v32, %s687_s27  ;;  %304 = vrot.lane.b32.xlu0 %v756_v33, %s687_s27 }
  0x26   : > { %314 = vrot.lane.b32.xlu1 %v760_v36, %s687_s27  ;;  %312 = vrot.lane.b32.xlu0 %v762_v37, %s687_s27 }
  0x2a   : > { %334 = vrot.lane.b32.xlu1 %v285_v29, %s688_s28  ;;  %332 = vrot.lane.b32.xlu0 %v747_v25, %s688_s28 }
  0x2e   : > { %342 = vrot.lane.b32.xlu1 %v751_v28, %s688_s28  ;;  %340 = vrot.lane.b32.xlu0 %v745_v24, %s688_s28 }
  0x32   : > { %338 = vrot.lane.b32.xlu1 %v754_v32, %s688_s28  ;;  %336 = vrot.lane.b32.xlu0 %v756_v33, %s688_s28 }
  0x36   : > { %346 = vrot.lane.b32.xlu1 %v760_v36, %s688_s28  ;;  %344 = vrot.lane.b32.xlu0 %v762_v37, %s688_s28 }
  0x3a   : > { %366 = vrot.lane.b32.xlu1 %v285_v29, %s689_s5  ;;  %364 = vrot.lane.b32.xlu0 %v747_v25, %s689_s5 }
  0x3e   : > { %374 = vrot.lane.b32.xlu1 %v751_v28, %s689_s5  ;;  %372 = vrot.lane.b32.xlu0 %v745_v24, %s689_s5 }
  0x42   : > { %370 = vrot.lane.b32.xlu1 %v754_v32, %s689_s5  ;;  %368 = vrot.lane.b32.xlu0 %v756_v33, %s689_s5 }
  0x46   : > { %378 = vrot.lane.b32.xlu1 %v760_v36, %s689_s5  ;;  %376 = vrot.lane.b32.xlu0 %v762_v37, %s689_s5 }
  0x8c   : > { %v309_v40 = vpop.permute.xlu1 %308  ;;  %v301_v41 = vpop.permute.xlu0 %300 }
  0x8d   : > { %v324_v56 = vadd.f32 %v301_v41, %v747_v25  ;;  %v328_v62 = vadd.f32 %v309_v40, %v745_v24 }
  0x90   : > { %v311_v42 = vpop.permute.xlu1 %310  ;;  %v303_v43 = vpop.permute.xlu0 %302 }
  0x91   : > { %v325_v57 = vadd.f32 %v303_v43, %v285_v29  ;;  %v329_v63 = vadd.f32 %v311_v42, %v751_v28 }
  0x94   : > { %v307_v44 = vpop.permute.xlu1 %306  ;;  %v305_v45 = vpop.permute.xlu0 %304 }
  0x95   : > { %v327_v7 = vadd.f32 %v307_v44, %v754_v32  ;;  %v326_v8 = vadd.f32 %v305_v45, %v756_v33 }
  0x98   : > { %v315_v46 = vpop.permute.xlu1 %314  ;;  %v313_v47 = vpop.permute.xlu0 %312 }
  0x99   : > { %v331_v16 = vadd.f32 %v315_v46, %v760_v36  ;;  %v330_v17 = vadd.f32 %v313_v47, %v762_v37 }
  0x9c   : > { %v335_v48 = vpop.permute.xlu1 %334  ;;  %v333_v49 = vpop.permute.xlu0 %332 }
  0x9d   : > { %v357_v58 = vadd.f32 %v335_v48, %v325_v57  ;;  %v356_v59 = vadd.f32 %v333_v49, %v324_v56 }
  0xa0   : > { %v343_v50 = vpop.permute.xlu1 %342  ;;  %v341_v51 = vpop.permute.xlu0 %340 }
  0xa1   : > { %v361_v2 = vadd.f32 %v343_v50, %v329_v63  ;;  %v360_v3 = vadd.f32 %v341_v51, %v328_v62 }
  0xa4   : > { %v339_v52 = vpop.permute.xlu1 %338  ;;  %v337_v53 = vpop.permute.xlu0 %336 }
  0xa5   : > { %v359_v11 = vadd.f32 %v339_v52, %v327_v7  ;;  %v358_v12 = vadd.f32 %v337_v53, %v326_v8 }
  0xa8   : > { %v347_v54 = vpop.permute.xlu1 %346  ;;  %v345_v55 = vpop.permute.xlu0 %344 }
  0xa9   : > { %v363_v20 = vadd.f32 %v347_v54, %v331_v16  ;;  %v362_v21 = vadd.f32 %v345_v55, %v330_v17 }
  0xac   : > { %v367_v60 = vpop.permute.xlu1 %366  ;;  %v365_v61 = vpop.permute.xlu0 %364 }
  0xad   : > { %v389_v0 = vadd.f32 %v367_v60, %v357_v58  ;;  %v388_v1 = vadd.f32 %v365_v61, %v356_v59 }
  0xaf   : > { %v396_v4 = vpack.c.bf16 %v389_v0, %v388_v1 }
  0xb0   : > { %v375_v5 = vpop.permute.xlu1 %374  ;;  %v373_v6 = vpop.permute.xlu0 %372 }
  0xb1   : > { %v393_v9 = vadd.f32 %v375_v5, %v361_v2  ;;  %v392_v10 = vadd.f32 %v373_v6, %v360_v3  ;;  %624 = vmatprep.mubr.msk.bf16.mxu0 %vm401_vm1, %v396_v4 }
  0xb3   : > { %v398_v13 = vpack.c.bf16 %v393_v9, %v392_v10 }
  0xb4   : > { %v371_v14 = vpop.permute.xlu1 %370  ;;  %v369_v15 = vpop.permute.xlu0 %368 }
  0xb5   : > { %v391_v18 = vadd.f32 %v371_v14, %v359_v11  ;;  %v390_v19 = vadd.f32 %v369_v15, %v358_v12  ;;  %628 = vmatprep.mubr.msk.bf16.mxu1 %vm401_vm1, %v398_v13 }
  0xb7   : > { %v397_v22 = vpack.c.bf16 %v391_v18, %v390_v19 }
  0xb8   : > { %v379_v23 = vpop.permute.xlu1 %378  ;;  %v377_v24 = vpop.permute.xlu0 %376 }
  0xb9   : > { %v395_v25 = vadd.f32 %v379_v23, %v363_v20  ;;  %v394_v26 = vadd.f32 %v377_v24, %v362_v21  ;;  %625 = vmatmul.mubr.msk.bf16.vlgmr.msra.gmra.mrb[0].mxu0 %vm401_vm1, %v397_v22 }
  0xbb   : > { %v399_v27 = vpack.c.bf16 %v395_v25, %v394_v26 }
  0xbd   : > { %629 = vmatmul.mubr.msk.bf16.vlgmr.msra.gmra.mrb[0].mxu1 %vm401_vm1, %v399_v27 }
 0x18c   : > { %v626_v28 = vpop.f32.mrb[0].mxu0 }
 0x18d   : > { %486 = vst.msk [vmem:[%s235_s9 + $0x10] sm:$0xff] %vm483_vm2, %v626_v28  ;;  %v452_v29 = vpop.f32.mrb[1].mxu0 }
 0x18e   : > { %484 = vst.msk [vmem:[%s235_s9] sm:$0xff] %vm483_vm2, %v452_v29  ;;  %v627_v30 = vpop.f32.mrb[2].mxu0 }
 0x18f   : > { %487 = vst.msk [vmem:[%s235_s9 + $0x18] sm:$0xff] %vm483_vm2, %v627_v30  ;;  %v455_v31 = vpop.f32.mrb[3].mxu0 }
 0x190   : > { %485 = vst.msk [vmem:[%s235_s9 + $0x8] sm:$0xff] %vm483_vm2, %v455_v31  ;;  %v630_v32 = vpop.f32.mrb[0].mxu1 }
 0x191   : > { %490 = vst.msk [vmem:[%s235_s9 + $0x30] sm:$0xff] %vm483_vm2, %v630_v32  ;;  %v468_v33 = vpop.f32.mrb[1].mxu1 }
 0x192   : > { %488 = vst.msk [vmem:[%s235_s9 + $0x20] sm:$0xff] %vm483_vm2, %v468_v33  ;;  %v631_v34 = vpop.f32.mrb[2].mxu1 }
 0x193   : > { %491 = vst.msk [vmem:[%s235_s9 + $0x38] sm:$0xff] %vm483_vm2, %v631_v34  ;;  %v471_v35 = vpop.f32.mrb[3].mxu1 }
 0x194   : > { %489 = vst.msk [vmem:[%s235_s9 + $0x28] sm:$0xff] %vm483_vm2, %v471_v35 }
 0x195 PF: > { %s14_s17 = sadd.s32 1, %s685_s17   ;;  %s820_s15 = smov %s681_s16 }
 0x196   : > { %p11_p5 = scmp.ge.s32.totalorder %s14_s17, 4   ;;  %s821_s16 = smov %s823_s18 }
 0x198   :  { %13 = sbr.rel (!%p11_p5) target bundleno = 2 (0x2), region = 66 }

</bundles_post_ra>
